<compile_context>
chip_gen: v5e
topology: v5e:2x2
jax: 0.10.0
libtpu: 0.0.40
codegen_flags: <defaults>
</compile_context>

<pallas_src>
import math

import jax
import jax.numpy as jnp
from jax.experimental import pallas as pl
from jax.experimental.pallas import tpu as pltpu


# --------------------------------- kernel ------------------------------------

def layer_scale_kernel(x_ref, g_ref, o_ref):
    # x_ref: (TR, D) row tile; g_ref: (1, D) per-channel scale (f32), broadcast
    # over rows.  Compute in f32, cast the result to the output dtype.
    x = x_ref[...].astype(jnp.float32)
    o_ref[...] = (x * g_ref[...]).astype(o_ref.dtype)


# --------------------------------- wrapper -----------------------------------

def _sublane(itemsize):
    # Sublane packing for the second-to-last dim by element width.
    return {4: 8, 2: 16, 1: 32}.get(itemsize, 8)


def layer_scale(x, gamma, *, inplace=False, target_tile_bytes=4 * 1024 * 1024):
    """LayerScale forward: x * gamma, gamma broadcast along the last dim.

    x:     (..., dim) array (any leading shape)
    gamma: (dim,) array (kept in f32 for the multiply)
    """
    orig_shape = x.shape
    dim = orig_shape[-1]
    assert gamma.shape == (dim,), f"gamma shape {gamma.shape} != ({dim},)"
    if x.size == 0:
        return x

    rows = math.prod(orig_shape[:-1]) if len(orig_shape) > 1 else 1

    # ---- lane folding: make the stored last dim a multiple of 128 -----------
    # dim not a multiple of 128 lowers to masked partial stores; fold k rows
    # into the lane axis (and tile gamma k times) so stores are full-lane.
    k = 1
    if dim % 128 != 0:
        k_cand = 128 // math.gcd(dim, 128)
        if k_cand > 1 and rows % k_cand == 0:
            k = k_cand
    rows_eff = rows // k
    dim_eff = dim * k

    x2 = x.reshape(rows_eff, dim_eff)
    g_eff = gamma if k == 1 else jnp.tile(gamma, k)
    g2 = g_eff.reshape(1, dim_eff).astype(jnp.float32)

    # ---- byte-aware row-tile sizing ------------------------------------------
    itemsize = jnp.dtype(x.dtype).itemsize
    sub = _sublane(itemsize)
    tr = max(sub, (target_tile_bytes // max(1, dim_eff * itemsize)) // sub * sub)
    if tr >= rows_eff:
        if rows_eff >= 2 * sub:
            # Keep at least 2 grid steps so a 2-TC chip (v7x) can shard rows.
            tr = ((rows_eff + 1) // 2 + sub - 1) // sub * sub
        else:
            tr = rows_eff  # single block equal to the full array (always legal)

    grid = (pl.cdiv(rows_eff, tr),)  # partial last block is masked; no pad/slice

    # 2 (double-buffer) x 2 (in+out) x <=4 MiB tiles + gamma stays well under
    # 32 MiB -> safe scoped limit on v5e / v6e / v7x alike.
    vmem_limit = 32 * 1024 * 1024

    call_kwargs = {}
    if inplace:
        # PyTorch inplace=True (x.mul_(gamma)): reuse x's HBM buffer for the out.
        call_kwargs["input_output_aliases"] = {0: 0}

    out = pl.pallas_call(
        layer_scale_kernel,
        out_shape=jax.ShapeDtypeStruct((rows_eff, dim_eff), x.dtype),
        grid=grid,
        in_specs=[
            pl.BlockSpec((tr, dim_eff), lambda i: (i, 0)),   # row tile of x
            pl.BlockSpec((1, dim_eff), lambda i: (0, 0)),    # gamma, VMEM-resident
        ],
        out_specs=pl.BlockSpec((tr, dim_eff), lambda i: (i, 0)),
        compiler_params=pltpu.CompilerParams(
            dimension_semantics=("parallel",),
            vmem_limit_bytes=vmem_limit,
        ),
        **call_kwargs,
    )(x2, g2)

    return out.reshape(orig_shape)


# ----------------------------------- main -------------------------------------

if __name__ == "__main__":
    key = jax.random.PRNGKey(0)
    k1, k2, k3, k4 = jax.random.split(key, 4)

    # 1) Module-default gamma on a tiny transformer shape (B=2, T=8, D=32).
    #    dim=32 -> lane-folded by k=4 to a 128-wide store slab.
    B, T, D = 2, 8, 32
    x = jax.random.normal(k1, (B, T, D), jnp.float32)
    init_values = 1e-5
    gamma0 = init_values * jnp.ones((D,), jnp.float32)
    out0 = jax.block_until_ready(layer_scale(x, gamma0))
    assert out0.shape == x.shape and out0.dtype == x.dtype
    assert bool(jnp.allclose(out0, x * gamma0, atol=1e-7, rtol=1e-6))

    # 2) Non-uniform gamma, rows not divisible by the row tile -> masked partial
    #    last block (no pad / slice), lane-folded small dim.
    gamma = 0.1 * jax.random.normal(k2, (D,), jnp.float32)
    x_big = jax.random.normal(k3, (3, 100, D), jnp.float32)   # 300 rows -> 75x128 folded
    out1 = jax.block_until_ready(layer_scale(x_big, gamma))
    assert out1.shape == x_big.shape
    assert bool(jnp.allclose(out1, x_big * gamma, atol=1e-6, rtol=1e-6))
    assert bool(jnp.all(jnp.isfinite(out1)))

    # 3) Lane-aligned dim (no folding), multi-step grid, bf16 activations with
    #    fp32 gamma (exercises the f32-promotion path).
    D2 = 256
    x_bf = jax.random.normal(k4, (4, 64, D2), jnp.float32).astype(jnp.bfloat16)
    gamma2 = 0.05 * jax.random.normal(k2, (D2,), jnp.float32)
    out2 = jax.block_until_ready(layer_scale(x_bf, gamma2))
    ref2 = (x_bf.astype(jnp.float32) * gamma2).astype(jnp.bfloat16)
    assert out2.dtype == jnp.bfloat16
    assert bool(jnp.allclose(out2.astype(jnp.float32), ref2.astype(jnp.float32),
                             atol=1e-2, rtol=1e-2))

    # 4) inplace=True variant: out aliases x's buffer (run under jit so XLA
    #    manages the aliasing cleanly).
    inplace_fn = jax.jit(lambda a, g: layer_scale(a, g, inplace=True))
    out3 = jax.block_until_ready(inplace_fn(x_big, gamma))
    assert bool(jnp.allclose(out3, x_big * gamma, atol=1e-6, rtol=1e-6))

    print("KERNEL_OK")
</pallas_src>

<mosaic_0001>
module attributes {stable_mosaic.version = 11 : i64} {
  func.func @layer_scale_kernel(%arg0: i32, %arg1: memref<4x128xf32, #tpu.memory_space<vmem>>, %arg2: memref<1x128xf32, #tpu.memory_space<vmem>>, %arg3: memref<4x128xf32, #tpu.memory_space<vmem>>) attributes {dimension_semantics = [#tpu.dimension_semantics<parallel>], iteration_bounds = array<i64: 1>, scalar_prefetch = 0 : i64, scratch_operands = 0 : i64, tpu.core_type = #tpu.core_type<tc>, window_params = [{transform_indices = @transform_0, window_bounds = array<i64: 4, 128>}, {pipeline_mode = #tpu.pipeline_mode<synchronous>, transform_indices = @transform_1, window_bounds = array<i64: 1, 128>}, {transform_indices = @transform_2, window_bounds = array<i64: 4, 128>}]} {
    %c0 = arith.constant 0 : index
    %c0_0 = arith.constant 0 : index
    %0 = vector.load %arg1[%c0, %c0_0] : memref<4x128xf32, #tpu.memory_space<vmem>>, vector<4x128xf32>
    %c0_1 = arith.constant 0 : index
    %c0_2 = arith.constant 0 : index
    %1 = vector.load %arg2[%c0_1, %c0_2] : memref<1x128xf32, #tpu.memory_space<vmem>>, vector<1x128xf32>
    %2 = vector.broadcast %1 : vector<1x128xf32> to vector<4x128xf32>
    %3 = arith.mulf %0, %2 : vector<4x128xf32>
    %c0_3 = arith.constant 0 : index
    %c0_4 = arith.constant 0 : index
    %4 = vector.load %arg3[%c0_3, %c0_4] : memref<4x128xf32, #tpu.memory_space<vmem>>, vector<4x128xf32>
    tpu.vector_store %arg3[%c0_3, %c0_4], %3 {strides = array<i32>} : memref<4x128xf32, #tpu.memory_space<vmem>>, vector<4x128xf32>,
    return
  }
  func.func @transform_0(%arg0: i32) -> (i32, i32) {
    %c0_i32 = arith.constant 0 : i32
    %c0_i32_0 = arith.constant 0 : i32
    return %arg0, %c0_i32 : i32, i32
  }
  func.func @transform_1(%arg0: i32) -> (i32, i32) {
    %c0_i32 = arith.constant 0 : i32
    %c0_i32_0 = arith.constant 0 : i32
    %c0_i32_1 = arith.constant 0 : i32
    return %c0_i32, %c0_i32_0 : i32, i32
  }
  func.func @transform_2(%arg0: i32) -> (i32, i32) {
    %c0_i32 = arith.constant 0 : i32
    %c0_i32_0 = arith.constant 0 : i32
    return %arg0, %c0_i32 : i32, i32
  }
}

</mosaic_0001>

<bundles_post_ra>
// kernel: tpu_custom_call.1
= control target key start
LH: loop header
LB: loop body
LE: loop exit
PB: predicated region body
PF: predicated region fallthrough
CT: control target
= control target key end

     0   :  { %7 = vsyncpa [#allocation3], 0  ;;  %s174_s0 = inlined_call_operand.hbm [shape: f32[4,128], index: 0, kind: input, shape index: {}]   ;;  %s175_s1 = inlined_call_operand.hbm [shape: f32[1,128], index: 1, kind: input, shape index: {}]   ;;  %s176_s2 = inlined_call_operand.hbm [shape: f32[4,128], index: 2, kind: output, shape index: {}]  }
   0x1   :  { %8 = vsyncpa [#allocation6], 0 }
   0x2   :  { %9 = vsyncpa [#allocation4], 0  ;;  %s15_s11 = sshll.u32 %s174_s0, 4  ;;  %s147_s12 = smov [#allocation2]   ;;  %s16_s11 = int_to_ptr.hbm [resolvable:$true] %s15_s11 }
   0x3   :  { %s17_s13 = sshll.u32 %s147_s12, 4  ;;  %s26_s16 = sshll.u32 %s175_s1, 4  ;;  %s18_s13 = int_to_ptr.vmem [resolvable:$true] %s17_s13  ;;  %s27_s16 = int_to_ptr.hbm [resolvable:$true] %s26_s16 }
   0x4   :  { %20 = dma.hbm_to_vmem [thread:$0]  %s16_s11, 64, %s18_s13, [#allocation3]  }
   0x5   :  { %s148_s17 = smov [#allocation5]  }
   0x6   :  { %s28_s18 = sshll.u32 %s148_s17, 4  ;;  %s29_s18 = int_to_ptr.vmem [resolvable:$true] %s28_s18 }
   0x7   :  { %31 = dma.hbm_to_vmem [thread:$0]  %s27_s16, 16, %s29_s18, [#allocation6]  }
   0x8   :  { %141 = dma.done.wait [#allocation3], 64  }
   0x9   :  { %142 = vsyncadd [#allocation3], 4294967232 }
   0xa   :  { %143 = dma.done.wait [#allocation6], 16  }
   0xb   :  { %144 = vsyncadd [#allocation6], 4294967280  ;;  %s149_s19 = smov [#allocation7]   ;;  %s54_s22 = sshll.u32 %s176_s2, 4  ;;  %v40_v0 = vld [vmem:[#allocation2] sm:$0xf]  ;;  %s55_s22 = int_to_ptr.hbm [resolvable:$true] %s54_s22 }
   0xc   :  { %s52_s0 = sshll.u32 %s149_s19, 4  ;;  %v68_v1 = vld [vmem:[#allocation5] ss:$0 sm:$0xff]  ;;  %s53_s0 = int_to_ptr.vmem [resolvable:$true] %s52_s0 }
   0xd   :  { %v45_v2 = vmul.f32 %v68_v1, %v40_v0 }
   0xf   :  { %46 = vst [vmem:[#allocation7] sm:$0xf] %v45_v2 }
  0x10   :  { %57 = dma.vmem_to_hbm [thread:$0]  %s53_s0, 64, %s55_s22, [#allocation4]  }
  0x11   :  { %145 = dma.done.wait [#allocation4], 64  }
  0x12   :  { %146 = vsyncadd [#allocation4], 4294967232 }
  0x13   :  { %62 = vsyncpa [#allocation3], 1 }
  0x14   :  { %63 = vsyncpa [#allocation6], 1 }
  0x15   :  { %64 = vsyncpa [#allocation4], 1 }

</bundles_post_ra>
